<compile_context>
chip_gen: v7x
topology: tpu7x:2x2x1
jax: 0.10.0
libtpu: 0.0.40
codegen_flags: <defaults>
</compile_context>

<pallas_src>
import functools

import jax
import jax.numpy as jnp
from jax.experimental import pallas as pl
from jax.experimental.pallas import tpu as pltpu


def _tb4_kernel(patches_ref, wcat_ref, gcat_ref, bcat_ref, out_ref, *, Cout, HoWo, eps):
    """Fused conv (both branches) + batch-stat BN + residual add + ParametricLIF fire.

    patches_ref: (K, N*HoWo)     bf16 im2col patches (shared, or [branch1 ; branch_ds] on K)
    wcat_ref   : (2*Cout, K)     bf16 [conv1 ; downsample] weights (block-diag if K stacked)
    gcat_ref   : (2*Cout, 1)     f32  [gamma1 ; gamma_ds] * sigmoid(w_lif)
    bcat_ref   : (2*Cout, 1)     f32  [beta1  ; beta_ds ] * sigmoid(w_lif)
    out_ref    : (N, Cout, HoWo) f32  binary spikes
    """
    # One MXU push for the whole batch and both branches (bf16 operands, f32 accumulation).
    y = jnp.dot(wcat_ref[...], patches_ref[...],
                preferred_element_type=jnp.float32)            # (2*Cout, N*HoWo)

    # Train-mode BatchNorm batch statistics (biased variance), two-pass / centered form.
    inv_m = 1.0 / float(y.shape[1])
    mean = jnp.sum(y, axis=1, keepdims=True) * inv_m           # (2*Cout, 1)
    yc = y - mean
    var = jnp.sum(yc * yc, axis=1, keepdims=True) * inv_m

    scale = gcat_ref[...] * jax.lax.rsqrt(var + eps)           # per-channel; includes sigmoid(w_lif)
    shift = bcat_ref[...] - mean * scale

    # Fused BN(branch1) + BN(downsample) + residual add + LIF charge:
    #   v = sigmoid(w_lif) * (bn1(y_top) + bn_ds(y_bot))
    v = (y[:Cout] * scale[:Cout] + y[Cout:] * scale[Cout:]
         + (shift[:Cout] + shift[Cout:]))                      # (Cout, N*HoWo)
    spikes = (v >= 1.0).astype(out_ref.dtype)

    for n in range(out_ref.shape[0]):                          # N lane-dense (Cout, 256) stores
        out_ref[n] = spikes[:, n * HoWo:(n + 1) * HoWo]


def _im2col(x_pad, ks, dil, Ho, Wo):
    """(N, Cin, Hp, Wp) -> (ks*ks*Cin, N*Ho*Wo); rows ordered (kh, kw, cin), cols (n, oh, ow)."""
    N, Cin = x_pad.shape[0], x_pad.shape[1]
    rows = []
    for kh in range(ks):
        for kw in range(ks):
            p = x_pad[:, :, kh * dil:kh * dil + Ho, kw * dil:kw * dil + Wo]   # (N, Cin, Ho, Wo)
            rows.append(jnp.transpose(p, (1, 0, 2, 3)).reshape(Cin, N * Ho * Wo))
    return jnp.concatenate(rows, axis=0)


def temporal_block4(x_nchw, w1, g1, b1, w_ds, g_ds, b_ds, w_lif, *,
                    kernel_size, stride, padding, dilation, eps=1e-5):
    """NCHW input -> NCHW spike output; both conv+BN branches, add and LIF in one kernel call."""
    N, Cin, H, W = x_nchw.shape
    Cout = w1.shape[0]
    ks = kernel_size
    assert stride == 1, "TODO(synk): stride != 1 not implemented"

    Ho = H + 2 * padding - dilation * (ks - 1)
    Wo = W + 2 * padding - dilation * (ks - 1)
    assert (Ho, Wo) == (H + 2 - (ks - 1), W + 2 - (ks - 1)), \
        "out + downsample(x) requires matching branch output shapes"
    HoWo = Ho * Wo
    M = N * HoWo
    K = ks * ks * Cin

    def to_mat(w):   # (Cout, Cin, kh, kw) -> (Cout, kh*kw*Cin), matching _im2col row order
        return jnp.transpose(w, (0, 2, 3, 1)).reshape(Cout, K).astype(jnp.float32)

    # bf16 MXU operands (halves patch DMA bytes); all BN/epilogue math stays f32.
    x_bf = x_nchw.astype(jnp.bfloat16)

    def padded(p):
        return jnp.pad(x_bf, ((0, 0), (0, 0), (p, p), (p, p)))

    w1m, wdm = to_mat(w1), to_mat(w_ds)
    if padding == 1 and dilation == 1:
        # Both branches share the same im2col geometry: one patch matrix, concatenated weights.
        patches = _im2col(padded(1), ks, 1, Ho, Wo)                                   # (K, M)
        wcat = jnp.concatenate([w1m, wdm], axis=0)                                    # (2C, K)
    else:
        # Different geometry: stack patches along K and use block-diagonal weights (K is tiny).
        patches = jnp.concatenate([_im2col(padded(padding), ks, dilation, Ho, Wo),
                                   _im2col(padded(1), ks, 1, Ho, Wo)], axis=0)        # (2K, M)
        z = jnp.zeros((Cout, K), jnp.float32)
        wcat = jnp.concatenate([jnp.concatenate([w1m, z], axis=1),
                                jnp.concatenate([z, wdm], axis=1)], axis=0)           # (2C, 2K)

    patches = patches.astype(jnp.bfloat16)
    wcat = wcat.astype(jnp.bfloat16)
    Krows = wcat.shape[1]

    sig = jax.nn.sigmoid(jnp.asarray(w_lif, jnp.float32))
    gcat = (jnp.concatenate([g1, g_ds]).astype(jnp.float32) * sig).reshape(2 * Cout, 1)
    bcat = (jnp.concatenate([b1, b_ds]).astype(jnp.float32) * sig).reshape(2 * Cout, 1)

    kernel = functools.partial(_tb4_kernel, Cout=Cout, HoWo=HoWo, eps=eps)

    out = pl.pallas_call(
        kernel,
        out_shape=jax.ShapeDtypeStruct((N, Cout, HoWo), jnp.float32),
        grid_spec=pltpu.PrefetchScalarGridSpec(
            num_scalar_prefetch=0,
            grid=(1,),                                               # whole problem in one step
            in_specs=[
                pl.BlockSpec((Krows, M), lambda i: (0, 0)),          # lane-dense im2col patches (bf16)
                pl.BlockSpec((2 * Cout, Krows), lambda i: (0, 0)),   # fused branch weights (bf16)
                pl.BlockSpec((2 * Cout, 1), lambda i: (0, 0)),       # gamma * sigmoid(w_lif)
                pl.BlockSpec((2 * Cout, 1), lambda i: (0, 0)),       # beta  * sigmoid(w_lif)
            ],
            out_specs=pl.BlockSpec((N, Cout, HoWo), lambda i: (0, 0, 0)),
        ),
        compiler_params=pltpu.CompilerParams(dimension_semantics=("arbitrary",)),
    )(patches, wcat, gcat, bcat)

    return out.reshape(N, Cout, Ho, Wo)     # contiguous reshape; no transpose needed


def _reference(x, w1, g1, b1, w_ds, g_ds, b_ds, w_lif, *,
               kernel_size, padding, dilation, eps=1e-5):
    """Pure-JAX reference of the forward pass (membrane potential v), using the same bf16
    conv-operand precision as the kernel's MXU path (accumulation in f32)."""
    xb = x.astype(jnp.bfloat16)

    def conv_bn(w, g, b, pad, dil):
        y = jax.lax.conv_general_dilated(
            xb, jnp.transpose(w, (2, 3, 1, 0)).astype(jnp.bfloat16),
            window_strides=(1, 1), padding=((pad, pad), (pad, pad)),
            rhs_dilation=(dil, dil),
            dimension_numbers=("NCHW", "HWIO", "NCHW"),
            preferred_element_type=jnp.float32)
        mean = y.mean(axis=(0, 2, 3), keepdims=True)
        var = ((y - mean) ** 2).mean(axis=(0, 2, 3), keepdims=True)
        return (y - mean) / jnp.sqrt(var + eps) * g.reshape(1, -1, 1, 1) + b.reshape(1, -1, 1, 1)

    out = conv_bn(w1, g1, b1, padding, dilation) + conv_bn(w_ds, g_ds, b_ds, 1, 1)
    return out * jax.nn.sigmoid(w_lif)


if __name__ == "__main__":
    N, Cin, Cout, H, W = 2, 4, 8, 16, 16
    kernel_size, stride, dilation, padding = 3, 1, 1, 1

    key = jax.random.PRNGKey(0)
    k1, k2, k3, k4, k5, k6, k7 = jax.random.split(key, 7)
    x = jax.random.normal(k1, (N, Cin, H, W), jnp.float32)
    w1 = 0.3 * jax.random.normal(k2, (Cout, Cin, kernel_size, kernel_size), jnp.float32)
    w_ds = 0.3 * jax.random.normal(k3, (Cout, Cin, kernel_size, kernel_size), jnp.float32)
    g1 = 1.0 + 0.1 * jax.random.normal(k4, (Cout,), jnp.float32)
    b1 = 0.1 * jax.random.normal(k5, (Cout,), jnp.float32)
    g_ds = 1.0 + 0.1 * jax.random.normal(k6, (Cout,), jnp.float32)
    b_ds = 0.1 * jax.random.normal(k7, (Cout,), jnp.float32)
    w_lif = jnp.float32(0.0)   # ParametricLIFNode init_tau=2.0 -> w = -log(tau - 1) = 0

    out = temporal_block4(x, w1, g1, b1, w_ds, g_ds, b_ds, w_lif,
                          kernel_size=kernel_size, stride=stride,
                          padding=padding, dilation=dilation)
    out = jax.block_until_ready(out)

    v_ref = _reference(x, w1, g1, b1, w_ds, g_ds, b_ds, w_lif,
                       kernel_size=kernel_size, padding=padding, dilation=dilation)
    spikes_ref = (v_ref >= 1.0).astype(jnp.float32)
    assert out.shape == spikes_ref.shape

    # Tolerance-aware spike check: ignore positions whose membrane potential sits within
    # `tol` of the 1.0 threshold (summation-order differences may legitimately flip those).
    tol = 1e-3
    decisive = jnp.abs(v_ref - 1.0) > tol
    mismatches = int(jnp.sum((out != spikes_ref) & decisive))
    assert mismatches == 0, f"{mismatches} spike mismatches vs pure-JAX reference"

    print("KERNEL_OK")
</pallas_src>

<mosaic_0001>
module attributes {stable_mosaic.version = 11 : i64} {
  func.func @_tb4_kernel(%arg0: i32, %arg1: memref<36x512xbf16, #tpu.memory_space<vmem>>, %arg2: memref<16x36xbf16, #tpu.memory_space<vmem>>, %arg3: memref<16x1xf32, #tpu.memory_space<vmem>>, %arg4: memref<16x1xf32, #tpu.memory_space<vmem>>, %arg5: memref<2x8x256xf32, #tpu.memory_space<vmem>>) attributes {dimension_semantics = [#tpu.dimension_semantics<arbitrary>], iteration_bounds = array<i64: 1>, scalar_prefetch = 0 : i64, scratch_operands = 0 : i64, tpu.core_type = #tpu.core_type<tc>, window_params = [{pipeline_mode = #tpu.pipeline_mode<synchronous>, transform_indices = @transform_0, window_bounds = array<i64: 36, 512>}, {pipeline_mode = #tpu.pipeline_mode<synchronous>, transform_indices = @transform_1, window_bounds = array<i64: 16, 36>}, {pipeline_mode = #tpu.pipeline_mode<synchronous>, transform_indices = @transform_2, window_bounds = array<i64: 16, 1>}, {pipeline_mode = #tpu.pipeline_mode<synchronous>, transform_indices = @transform_3, window_bounds = array<i64: 16, 1>}, {pipeline_mode = #tpu.pipeline_mode<synchronous>, transform_indices = @transform_4, window_bounds = array<i64: 2, 8, 256>}]} {
    %c0 = arith.constant 0 : index
    %c0_0 = arith.constant 0 : index
    %0 = vector.load %arg2[%c0, %c0_0] : memref<16x36xbf16, #tpu.memory_space<vmem>>, vector<16x36xbf16>
    %c0_1 = arith.constant 0 : index
    %c0_2 = arith.constant 0 : index
    %1 = vector.load %arg1[%c0_1, %c0_2] : memref<36x512xbf16, #tpu.memory_space<vmem>>, vector<36x512xbf16>
    %cst = arith.constant dense<0.000000e+00> : vector<16x512xf32>
    %2 = tpu.matmul %0, %1, %cst {dimension_numbers = #tpu.dot_dimension_numbers<[1], [0], [0], [1], [0, 0, 1, 1], [], []>} : vector<16x36xbf16>, vector<36x512xbf16>, vector<16x512xf32> -> vector<16x512xf32>
    %cst_3 = arith.constant dense<0.000000e+00> : vector<16xf32>
    %3 = vector.multi_reduction <add>, %2, %cst_3 [1] : vector<16x512xf32> to vector<16xf32>
    %4 = vector.shape_cast %3 : vector<16xf32> to vector<16x1xf32>
    %cst_4 = arith.constant 0.001953125 : f32
    %5 = vector.broadcast %cst_4 : f32 to vector<16x1xf32>
    %6 = arith.mulf %4, %5 : vector<16x1xf32>
    %7 = vector.broadcast %6 : vector<16x1xf32> to vector<16x512xf32>
    %8 = arith.subf %2, %7 : vector<16x512xf32>
    %9 = arith.mulf %8, %8 : vector<16x512xf32>
    %cst_5 = arith.constant dense<0.000000e+00> : vector<16xf32>
    %10 = vector.multi_reduction <add>, %9, %cst_5 [1] : vector<16x512xf32> to vector<16xf32>
    %11 = vector.shape_cast %10 : vector<16xf32> to vector<16x1xf32>
    %cst_6 = arith.constant 0.001953125 : f32
    %12 = vector.broadcast %cst_6 : f32 to vector<16x1xf32>
    %13 = arith.mulf %11, %12 : vector<16x1xf32>
    %c0_7 = arith.constant 0 : index
    %c0_8 = arith.constant 0 : index
    %14 = vector.load %arg3[%c0_7, %c0_8] : memref<16x1xf32, #tpu.memory_space<vmem>>, vector<16x1xf32>
    %cst_9 = arith.constant 9.99999974E-6 : f32
    %15 = vector.broadcast %cst_9 : f32 to vector<16x1xf32>
    %16 = arith.addf %13, %15 : vector<16x1xf32>
    %17 = math.rsqrt %16 : vector<16x1xf32>
    %18 = arith.mulf %14, %17 : vector<16x1xf32>
    %c0_10 = arith.constant 0 : index
    %c0_11 = arith.constant 0 : index
    %19 = vector.load %arg4[%c0_10, %c0_11] : memref<16x1xf32, #tpu.memory_space<vmem>>, vector<16x1xf32>
    %20 = arith.mulf %6, %18 : vector<16x1xf32>
    %21 = arith.subf %19, %20 : vector<16x1xf32>
    %22 = vector.extract_strided_slice %2 {offsets = [0, 0], sizes = [8, 512], strides = [1, 1]} : vector<16x512xf32> to vector<8x512xf32>
    %23 = vector.extract_strided_slice %18 {offsets = [0, 0], sizes = [8, 1], strides = [1, 1]} : vector<16x1xf32> to vector<8x1xf32>
    %24 = vector.broadcast %23 : vector<8x1xf32> to vector<8x512xf32>
    %25 = arith.mulf %22, %24 : vector<8x512xf32>
    %26 = vector.extract_strided_slice %2 {offsets = [8, 0], sizes = [8, 512], strides = [1, 1]} : vector<16x512xf32> to vector<8x512xf32>
    %27 = vector.extract_strided_slice %18 {offsets = [8, 0], sizes = [8, 1], strides = [1, 1]} : vector<16x1xf32> to vector<8x1xf32>
    %28 = vector.broadcast %27 : vector<8x1xf32> to vector<8x512xf32>
    %29 = arith.mulf %26, %28 : vector<8x512xf32>
    %30 = arith.addf %25, %29 : vector<8x512xf32>
    %31 = vector.extract_strided_slice %21 {offsets = [0, 0], sizes = [8, 1], strides = [1, 1]} : vector<16x1xf32> to vector<8x1xf32>
    %32 = vector.extract_strided_slice %21 {offsets = [8, 0], sizes = [8, 1], strides = [1, 1]} : vector<16x1xf32> to vector<8x1xf32>
    %33 = arith.addf %31, %32 : vector<8x1xf32>
    %34 = vector.broadcast %33 : vector<8x1xf32> to vector<8x512xf32>
    %35 = arith.addf %30, %34 : vector<8x512xf32>
    %cst_12 = arith.constant 1.000000e+00 : f32
    %36 = vector.broadcast %cst_12 : f32 to vector<8x512xf32>
    %37 = arith.cmpf oge, %35, %36 : vector<8x512xf32>
    %38 = arith.extui %37 : vector<8x512xi1> to vector<8x512xi32>
    %39 = arith.sitofp %38 : vector<8x512xi32> to vector<8x512xf32>
    %40 = vector.extract_strided_slice %39 {offsets = [0, 0], sizes = [8, 256], strides = [1, 1]} : vector<8x512xf32> to vector<8x256xf32>
    %c0_13 = arith.constant 0 : index
    %c0_14 = arith.constant 0 : index
    %c0_15 = arith.constant 0 : index
    %41 = vector.load %arg5[%c0_13, %c0_14, %c0_15] : memref<2x8x256xf32, #tpu.memory_space<vmem>>, vector<1x8x256xf32>
    %42 = vector.shape_cast %41 : vector<1x8x256xf32> to vector<8x256xf32>
    %43 = vector.shape_cast %40 : vector<8x256xf32> to vector<1x8x256xf32>
    tpu.vector_store %arg5[%c0_13, %c0_14, %c0_15], %43 {strides = array<i32>} : memref<2x8x256xf32, #tpu.memory_space<vmem>>, vector<1x8x256xf32>,
    %44 = vector.extract_strided_slice %39 {offsets = [0, 256], sizes = [8, 256], strides = [1, 1]} : vector<8x512xf32> to vector<8x256xf32>
    %c1 = arith.constant 1 : index
    %c0_16 = arith.constant 0 : index
    %c0_17 = arith.constant 0 : index
    %45 = vector.load %arg5[%c1, %c0_16, %c0_17] : memref<2x8x256xf32, #tpu.memory_space<vmem>>, vector<1x8x256xf32>
    %46 = vector.shape_cast %45 : vector<1x8x256xf32> to vector<8x256xf32>
    %47 = vector.shape_cast %44 : vector<8x256xf32> to vector<1x8x256xf32>
    tpu.vector_store %arg5[%c1, %c0_16, %c0_17], %47 {strides = array<i32>} : memref<2x8x256xf32, #tpu.memory_space<vmem>>, vector<1x8x256xf32>,
    return
  }
  func.func @transform_0(%arg0: i32) -> (i32, i32) {
    %c0_i32 = arith.constant 0 : i32
    %c0_i32_0 = arith.constant 0 : i32
    %c0_i32_1 = arith.constant 0 : i32
    return %c0_i32, %c0_i32_0 : i32, i32
  }
  func.func @transform_1(%arg0: i32) -> (i32, i32) {
    %c0_i32 = arith.constant 0 : i32
    %c0_i32_0 = arith.constant 0 : i32
    %c0_i32_1 = arith.constant 0 : i32
    return %c0_i32, %c0_i32_0 : i32, i32
  }
  func.func @transform_2(%arg0: i32) -> (i32, i32) {
    %c0_i32 = arith.constant 0 : i32
    %c0_i32_0 = arith.constant 0 : i32
    %c0_i32_1 = arith.constant 0 : i32
    return %c0_i32, %c0_i32_0 : i32, i32
  }
  func.func @transform_3(%arg0: i32) -> (i32, i32) {
    %c0_i32 = arith.constant 0 : i32
    %c0_i32_0 = arith.constant 0 : i32
    %c0_i32_1 = arith.constant 0 : i32
    return %c0_i32, %c0_i32_0 : i32, i32
  }
  func.func @transform_4(%arg0: i32) -> (i32, i32, i32) {
    %c0_i32 = arith.constant 0 : i32
    %c0_i32_0 = arith.constant 0 : i32
    %c0_i32_1 = arith.constant 0 : i32
    %c0_i32_2 = arith.constant 0 : i32
    return %c0_i32, %c0_i32_0, %c0_i32_1 : i32, i32, i32
  }
}

</mosaic_0001>

<bundles_post_ra>
// kernel: tpu_custom_call.1
= control target key start
LH: loop header
LB: loop body
LE: loop exit
PB: predicated region body
PF: predicated region fallthrough
CT: control target
= control target key end

     0   :  { %9 = vsyncpa [#allocation3], 0  ;;  %s537_s0 = inlined_call_operand.hbm [shape: bf16[36,512], index: 0, kind: input, shape index: {}]   ;;  %s538_s1 = inlined_call_operand.vmem [shape: bf16[16,36], index: 1, kind: input, shape index: {}]   ;;  %s539_s2 = inlined_call_operand.vmem [shape: f32[16,1], index: 2, kind: input, shape index: {}]   ;;  %s540_s3 = inlined_call_operand.vmem [shape: f32[16,1], index: 3, kind: input, shape index: {}]   ;;  %s541_s4 = inlined_call_operand.hbm [shape: f32[2,8,256], index: 4, kind: output, shape index: {}]  }
   0x1   :  { %10 = vsyncpa [#allocation4], 0  ;;  %s421_s15 = smov [#allocation2]   ;;  %s373_s19 = scalar_lea.hbm %s537_s0, 1280 }
   0x2   :  { %s16_s16 = sshll.u32 %s421_s15, 4  ;;  %p374_p0 = scmp.ne.s32.totalorder %s537_s0, %s373_s19  ;;  %s17_s16 = int_to_ptr.vmem [resolvable:$true] %s16_s16 }
   0x3   :  { %p377_p1 = scmp.lt.u32.totalorder %s373_s19, %s537_s0 }
   0x5   :  { %p379_p2 = pnand %p377_p1, %p374_p0 }
   0x7   :  { %382 = shalt.err (!%p379_p2)
}
   0x8   :  { %s383_s24 = scalar_lea.vmem %s17_s16, 1280  ;;  %p388_p4 = scmp.lt.s32.totalorder %s17_s16, %s17_s16 }
   0x9   :  { %p384_p3 = scmp.ne.s32.totalorder %s17_s16, %s383_s24  ;;  %p389_p5 = scmp.lt.s32.totalorder %s383_s24, %s383_s24 }
   0xb   :  { %p390_p6 = por %p389_p5, %p388_p4 }
   0xd   :  { %p391_p7 = pnand %p390_p6, %p384_p3 }
   0xf   :  { %394 = shalt.err (!%p391_p7)
}
  0x10   :  { %s422_s25 = smov 256   ;;  %s423_s26 = smov 16  }
  0x11   :  { %22 = dma.hbm_to_vmem [thread:$0]  %s537_s0, 1280, %s17_s16, [#allocation3], %s422_s25, %s422_s25, %s423_s26  }
  0x12   :  { %417 = dma.done.wait [#allocation3], 1280  }
  0x13   :  { %418 = vsyncadd [#allocation3], 4294966016  ;;  %v424_v0 = vmov 0   ;;  %v352_v1 = vld [vmem:[#allocation2 + $0x4] ss:$16 sps:$4 sm:$0xff]   ;;  %vm104_vm0 = vcmask 1041408  }
  0x14   :  { %149 = vmatprep.mubr.bf16.mxu0 %v424_v0  ;;  %192 = vmatprep.mubr.bf16.mxu1 %v424_v0  ;;  %v354_v2 = vld [vmem:[#allocation2 + $0xc] ss:$16 sps:$4 sm:$0xff]   ;;  %v356_v3 = vld [vmem:[#allocation2] ss:$16 sps:$4 sm:$0xff]   ;;  %v357_v4 = vld [vmem:[#allocation2 + $0x8] ss:$16 sps:$4 sm:$0xff]  }
  0x15   :  { %350 = vset.pattern.permute.xlu0 %v424_v0  ;;  %351 = vset.pattern.permute.xlu1 %v424_v0  ;;  %v358_v5 = vld [vmem:[#allocation2 + $0x24] ss:$16 sps:$4 sm:$0xff]   ;;  %v360_v6 = vld [vmem:[#allocation2 + $0x2c] ss:$16 sps:$4 sm:$0xff]   ;;  %v362_v7 = vld [vmem:[#allocation2 + $0x20] ss:$16 sps:$4 sm:$0xff]  }
  0x16   :  { %117 = vmatprep.subr.bf16.mxu0 %v352_v1  ;;  %160 = vmatprep.subr.bf16.mxu1 %v354_v2  ;;  %v363_v8 = vld [vmem:[#allocation2 + $0x28] ss:$16 sps:$4 sm:$0xff]   ;;  %v43_v9 = vld [vmem:[#allocation2 + $0x40] sm:$0x33]  ;;  %vm100_vm1 = vcmask 293888  }
  0x17   :  { %118 = vmatpush1.bf16.msra.mxu0 %v356_v3  ;;  %161 = vmatpush1.bf16.msra.mxu1 %v357_v4  ;;  %v44_v10 = vld [vmem:[#allocation2 + $0x48] sm:$0x33]  ;;  %v333_v11 = vcombine.high %v43_v9, %v43_v9  ;;  %v332_v13 = vcombine.low %v43_v9, %v43_v9  ;;  %v368_v17 = vld [vmem:[%s538_s1] sm:$0xff]  }
  0x18   :  { %119 = vmatprep.subr.bf16.mxu0 %v358_v5  ;;  %162 = vmatprep.subr.bf16.mxu1 %v360_v6  ;;  %v335_v12 = vcombine.high %v44_v10, %v44_v10  ;;  %v334_v14 = vcombine.low %v44_v10, %v44_v10  ;;  %v243_v0 = vld [vmem:[%s539_s2] sm:$0xff]  ;;  %v244_v3 = vld [vmem:[%s539_s2 + $0x8] sm:$0xff]  ;;  %s425_s2 = smov [#allocation5]  }
  0x19   :  { %v106_v15 = vsel %vm104_vm0, %v332_v13, 0 }
  0x1a   :  { %v112_v16 = vsel %vm104_vm0, %v334_v14, 0 }
  0x1b   :  { %120 = vmatpush1.bf16.msra.mxu0 %v362_v7  ;;  %163 = vmatpush1.bf16.msra.mxu1 %v363_v8  ;;  %v251_v7 = vld [vmem:[%s540_s3] sm:$0xff]  ;;  %v252_v8 = vld [vmem:[%s540_s3 + $0x8] sm:$0xff]  ;;  %s311_s3 = sshll.u32 %s425_s2, 4  ;;  %s312_s3 = int_to_ptr.vmem [resolvable:$true] %s311_s3 }
  0x1c   :  { %336 = vmatprep.subr.msk.bf16.mxu0 %vm104_vm0, %v333_v11  ;;  %338 = vmatprep.subr.msk.bf16.mxu1 %vm104_vm0, %v335_v12  ;;  %s395_s11 = scalar_lea.vmem %s312_s3, 512  ;;  %p400_p9 = scmp.lt.s32.totalorder %s312_s3, %s312_s3 }
  0x1d   :  { %p396_p8 = scmp.ne.s32.totalorder %s312_s3, %s395_s11  ;;  %p401_p10 = scmp.lt.s32.totalorder %s395_s11, %s395_s11 }
  0x1f   :  { %122 = vmatpush1.bf16.msra.mxu0 %v106_v15  ;;  %165 = vmatpush1.bf16.msra.mxu1 %v112_v16  ;;  %p402_p11 = por %p401_p10, %p400_p9 }
  0x21   :  { %p403_p12 = pnand %p402_p11, %p396_p8 }
  0x22   :  { %337 = vmatmul.mubr.msk.bf16.vlgmr.msra.gmra.mrb[0].mxu0 %vm100_vm1, %v368_v17  ;;  %339 = vmatmul.mubr.msk.bf16.vlgmr.msra.gmra.mrb[0].mxu1 %vm100_vm1, %v368_v17 }
  0xf5   :  { %v470_v18 = vpop.f32.mrb[0].mxu0  ;;  %v472_v19 = vpop.f32.mrb[0].mxu1 }
  0xf6   :  { %v474_v20 = vpop.f32.mrb[1].mxu0  ;;  %v476_v21 = vpop.f32.mrb[1].mxu1 }
  0xf7   :  { %v203_v22 = vadd.f32 %v474_v20, %v470_v18  ;;  %v480_v23 = vpop.f32.mrb[2].mxu0  ;;  %v482_v24 = vpop.f32.mrb[2].mxu1 }
  0xf8   :  { %v484_v25 = vpop.f32.mrb[3].mxu0  ;;  %v486_v26 = vpop.f32.mrb[3].mxu1 }
  0xf9   :  { %v208_v27 = vadd.f32 %v484_v25, %v480_v23  ;;  %v204_v28 = vadd.f32 %v203_v22, %v472_v19 }
  0xfb   :  { %v205_v29 = vadd.f32 %v204_v28, %v476_v21  ;;  %v209_v30 = vadd.f32 %v208_v27, %v482_v24 }
  0xfd   :  { %206 = vadd.xlane.f32.xlu0 %v205_v29  ;;  %v210_v31 = vadd.f32 %v209_v30, %v486_v26 }
 0x101   :  { %211 = vadd.xlane.f32.xlu0 %v210_v31 }
 0x18a   :  { %v207_v32 = vpop.xlane.xlu0 %206 }
 0x18b   :  { %v213_v33 = vmul.f32 0.001953125, %v207_v32 }
 0x18d   :  { %v215_v34 = vsub.f32 %v470_v18, %v213_v33  ;;  %v216_v35 = vsub.f32 %v474_v20, %v213_v33  ;;  %v217_v36 = vsub.f32 %v472_v19, %v213_v33  ;;  %v218_v38 = vsub.f32 %v476_v21, %v213_v33 }
 0x18e   :  { %v212_v37 = vpop.xlane.xlu0 %211 }
 0x18f   :  { %v214_v39 = vmul.f32 0.001953125, %v212_v37  ;;  %v223_v40 = vmul.f32 %v215_v34, %v215_v34  ;;  %v224_v41 = vmul.f32 %v216_v35, %v216_v35  ;;  %v225_v42 = vmul.f32 %v217_v36, %v217_v36 }
 0x190   :  { %v226_v47 = vmul.f32 %v218_v38, %v218_v38 }
 0x191   :  { %v231_v43 = vadd.f32 %v224_v41, %v223_v40  ;;  %v219_v44 = vsub.f32 %v480_v23, %v214_v39  ;;  %v220_v45 = vsub.f32 %v484_v25, %v214_v39  ;;  %v221_v46 = vsub.f32 %v482_v24, %v214_v39 }
 0x192   :  { %v222_v49 = vsub.f32 %v486_v26, %v214_v39 }
 0x193   :  { %v232_v48 = vadd.f32 %v231_v43, %v225_v42  ;;  %v227_v50 = vmul.f32 %v219_v44, %v219_v44  ;;  %v228_v51 = vmul.f32 %v220_v45, %v220_v45  ;;  %v229_v53 = vmul.f32 %v221_v46, %v221_v46 }
 0x194   :  { %v230_v55 = vmul.f32 %v222_v49, %v222_v49 }
 0x195   :  { %v233_v52 = vadd.f32 %v232_v48, %v226_v47  ;;  %v236_v54 = vadd.f32 %v228_v51, %v227_v50 }
 0x197   :  { %234 = vadd.xlane.f32.xlu1 %v233_v52  ;;  %v237_v56 = vadd.f32 %v236_v54, %v229_v53 }
 0x199   :  { %v238_v57 = vadd.f32 %v237_v56, %v230_v55 }
 0x19b   :  { %239 = vadd.xlane.f32.xlu1 %v238_v57 }
 0x224   :  { %v235_v58 = vpop.xlane.xlu1 %234 }
 0x225   :  { %v241_v59 = vmul.f32 0.001953125, %v235_v58 }
 0x227   :  { %v245_v60 = vadd.f32 1e-05, %v241_v59 }
 0x228   :  { %v240_v61 = vpop.xlane.xlu1 %239 }
 0x229   :  { %369 = vrsqrt.f32 %v245_v60  ;;  %v242_v62 = vmul.f32 0.001953125, %v240_v61 }
 0x22b   :  { %v246_v63 = vadd.f32 1e-05, %v242_v62 }
 0x22d   :  { %371 = vrsqrt.f32 %v246_v63 }
 0x233   :  { %v370_v1 = vpop.eup %369 }
 0x234   :  { %v249_v2 = vmul.f32 %v370_v1, %v243_v0 }
 0x236   :  { %259 = vperm.xlu0 %350, %v249_v2   ;;  %v253_v5 = vmul.f32 %v249_v2, %v213_v33 }
 0x237   :  { %v372_v4 = vpop.eup %371 }
 0x238   :  { %v250_v6 = vmul.f32 %v372_v4, %v244_v3  ;;  %v255_v10 = vsub.f32 %v251_v7, %v253_v5 }
 0x23a   :  { %268 = vperm.xlu1 %351, %v250_v6   ;;  %v254_v9 = vmul.f32 %v250_v6, %v214_v39 }
 0x23c   :  { %v256_v11 = vsub.f32 %v252_v8, %v254_v9 }
 0x23e   :  { %v279_v12 = vadd.f32 %v256_v11, %v255_v10 }
 0x240   :  { %282 = vperm.xlu1 %351, %v279_v12  }
 0x2b5   :  { %v260_v13 = vpop.permute.xlu0 %259 }
 0x2b6   :  { %v262_v14 = vmul.f32 %v260_v13, %v470_v18  ;;  %v263_v15 = vmul.f32 %v260_v13, %v474_v20  ;;  %v264_v16 = vmul.f32 %v260_v13, %v472_v19  ;;  %v265_v17 = vmul.f32 %v260_v13, %v476_v21 }
 0x2b9   :  { %v269_v22 = vpop.permute.xlu1 %268 }
 0x2ba   :  { %v271_v27 = vmul.f32 %v269_v22, %v480_v23  ;;  %v272_v28 = vmul.f32 %v269_v22, %v484_v25  ;;  %v273_v29 = vmul.f32 %v269_v22, %v482_v24  ;;  %v274_v30 = vmul.f32 %v269_v22, %v486_v26 }
 0x2bb   :  { %v426_v23 = vmov 0.0  }
 0x2bc   :  { %v275_v31 = vadd.f32 %v271_v27, %v262_v14  ;;  %v276_v32 = vadd.f32 %v272_v28, %v263_v15  ;;  %v277_v33 = vadd.f32 %v273_v29, %v264_v16  ;;  %v278_v34 = vadd.f32 %v274_v30, %v265_v17 }
 0x2bf   :  { %v283_v18 = vpop.permute.xlu1 %282 }
 0x2c0   :  { %v285_v20 = vadd.f32 %v283_v18, %v275_v31  ;;  %v286_v19 = vadd.f32 %v283_v18, %v276_v32  ;;  %v287_v35 = vadd.f32 %v283_v18, %v277_v33  ;;  %v288_v21 = vadd.f32 %v283_v18, %v278_v34 }
 0x2c2   :  { %vm289_vm2 = vcmp.ge.f32.partialorder %v285_v20, 1.0  ;;  %vm290_vm3 = vcmp.ge.f32.partialorder %v286_v19, 1.0  ;;  %vm291_vm4 = vcmp.ge.f32.partialorder %v287_v35, 1.0  ;;  %vm292_vm5 = vcmp.ge.f32.partialorder %v288_v21, 1.0 }
 0x2c3   :  { %v340_v24 = vsel %vm289_vm2, 1.0, %v426_v23  ;;  %v341_v25 = vsel %vm290_vm3, 1.0, %v426_v23  ;;  %v342_v26 = vsel %vm291_vm4, 1.0, %v426_v23  ;;  %v343_v36 = vsel %vm292_vm5, 1.0, %v426_v23 }
 0x2c4   :  { %301 = vst [vmem:[#allocation5] sm:$0xff] %v340_v24  ;;  %302 = vst [vmem:[#allocation5 + $0x8] sm:$0xff] %v341_v25 }
 0x2c5   :  { %304 = vst [vmem:[#allocation5 + $0x10] sm:$0xff] %v342_v26  ;;  %305 = vst [vmem:[#allocation5 + $0x18] sm:$0xff] %v343_v36 }
 0x2c6   :  { %406 = shalt.err (!%p403_p12)
}
 0x2c7   :  { %s407_s14 = scalar_lea.hbm %s541_s4, 512 }
 0x2c8   :  { %p408_p13 = scmp.ne.s32.totalorder %s541_s4, %s407_s14  ;;  %p411_p0 = scmp.lt.u32.totalorder %s407_s14, %s541_s4 }
 0x2ca   :  { %p413_p1 = pnand %p411_p0, %p408_p13 }
 0x2cc   :  { %416 = shalt.err (!%p413_p1)
}
 0x2cd   :  { %317 = dma.vmem_to_hbm [thread:$0]  %s312_s3, 512, %s541_s4, [#allocation4], %s422_s25, %s422_s25, %s423_s26  }
 0x2ce   :  { %419 = dma.done.wait [#allocation4], 512  }
 0x2cf   :  { %420 = vsyncadd [#allocation4], 4294966784 }
 0x2d0   :  { %321 = vsyncpa [#allocation3], 1 }
 0x2d1   :  { %322 = vsyncpa [#allocation4], 1 }

</bundles_post_ra>
